<compile_context>
chip_gen: v7x
topology: tpu7x:2x2x1
jax: 0.10.0
libtpu: 0.0.40
codegen_flags: <defaults>
</compile_context>

<pallas_src>
import math

import jax
import jax.numpy as jnp
from jax import lax
from jax.experimental import pallas as pl
from jax.experimental.pallas import tpu as pltpu


_SQRT_HALF = 1.0 / math.sqrt(2.0)


def _round_up(x, m):
    return ((x + m - 1) // m) * m


def _cdiv(a, b):
    return -(-a // b)


def _vmem_cap_bytes():
    """Generation-aware VMEM budget (leaves headroom for Mosaic internals)."""
    phys = 64 << 20
    try:
        info = pltpu.get_tpu_info()
        phys = int(getattr(info, "vmem_capacity_bytes", phys))
    except Exception:
        pass
    if phys >= (128 << 20):            # v5e / v6e: 128 MiB physical VMEM
        return 100 << 20
    # 64-MiB parts (v7x-class): keep ~12 MiB headroom for scratch/semaphores.
    return min(max(phys - (12 << 20), 32 << 20), 52 << 20)


# ----------------------------- kernels --------------------------------------


def _expert_kernel_fused(x_ref, w1_ref, b1_ref, w2_ref, b2_ref, o_ref):
    # fc1 on the MXU, f32 accumulation.
    h = jnp.dot(x_ref[...], w1_ref[...], preferred_element_type=jnp.float32)
    h = h + b1_ref[...].astype(jnp.float32)
    # Exact (erf-based) GELU, matching torch.nn.GELU() default, in f32.
    g = 0.5 * h * (1.0 + lax.erf(h * _SQRT_HALF))
    # fc2 on the MXU, f32 accumulation.
    out = jnp.dot(g.astype(w2_ref.dtype), w2_ref[...],
                  preferred_element_type=jnp.float32)
    o_ref[...] = (out + b2_ref[...].astype(jnp.float32)).astype(o_ref.dtype)


def _expert_kernel_ntiled(x_ref, w1_ref, b1_ref, w2_ref, b2_ref, o_ref, g_ref):
    # N-tiled variant: GELU(fc1(x)) is computed once per M tile (at j == 0)
    # and cached in VMEM scratch; each N tile only runs fc2 against it.
    @pl.when(pl.program_id(1) == 0)
    def _():
        h = jnp.dot(x_ref[...], w1_ref[...], preferred_element_type=jnp.float32)
        h = h + b1_ref[...].astype(jnp.float32)
        g_ref[...] = (0.5 * h * (1.0 + lax.erf(h * _SQRT_HALF))).astype(g_ref.dtype)

    out = jnp.dot(g_ref[...], w2_ref[...], preferred_element_type=jnp.float32)
    o_ref[...] = (out + b2_ref[...].astype(jnp.float32)).astype(o_ref.dtype)


# ----------------------------- wrapper ---------------------------------------


def prepare_expert_params(w1, b1, w2, b2, *, compute_dtype=jnp.bfloat16):
    """Pad feature dims to lane multiples (128) and cast weights ONCE at setup.

    w1: [K, H], b1: [1, H] or [H], w2: [H, N], b2: [1, N] or [N]
    (weights stored transposed vs. PyTorch, i.e. [in, out]).
    """
    k, h = w1.shape
    n = w2.shape[1]
    k_p, h_p, n_p = _round_up(k, 128), _round_up(h, 128), _round_up(n, 128)
    cdt = jnp.dtype(compute_dtype) if compute_dtype is not None else jnp.dtype(w1.dtype)
    b1 = jnp.asarray(b1, jnp.float32).reshape(1, h)
    b2 = jnp.asarray(b2, jnp.float32).reshape(1, n)
    return {
        "w1": jnp.pad(w1.astype(cdt), ((0, k_p - k), (0, h_p - h))),
        "b1": jnp.pad(b1, ((0, 0), (0, h_p - h))),
        "w2": jnp.pad(w2.astype(cdt), ((0, h_p - h), (0, n_p - n))),
        "b2": jnp.pad(b2, ((0, 0), (0, n_p - n))),
        "k": k, "h": h, "n": n, "compute_dtype": cdt,
    }


def _vmem_need(tm, tn, k_p, h_p, n_p, wbytes, obytes, single_w):
    """Buffer-multiplicity-aware VMEM estimate for one TensorCore."""
    n_tiled = tn != n_p
    w1_bufs = 1 if single_w else 2
    w2_bufs = 2 if (n_tiled or not single_w) else 1
    return (k_p * h_p * wbytes * w1_bufs          # w1 (VMEM-resident)
            + h_p * 4 * w1_bufs                   # b1 (f32)
            + h_p * tn * wbytes * w2_bufs         # w2 (resident or streamed)
            + tn * 4 * w2_bufs                    # b2
            + 2 * tm * k_p * wbytes               # x tiles (double-buffered)
            + 2 * tm * tn * obytes                # out tiles (double-buffered)
            + 2 * tm * h_p * 4                    # h / g f32 temporaries
            + tm * h_p * wbytes                   # g cast / scratch copy
            + tm * tn * 4)                        # f32 fc2 accumulator


def expert_forward(x, params, *, tm=None, tn=None):
    """y = fc2(GELU(fc1(x))) with prepared (padded / pre-cast) params."""
    w1_p, b1_p, w2_p, b2_p = params["w1"], params["b1"], params["w2"], params["b2"]
    k, n = params["k"], params["n"]
    cdt = params["compute_dtype"]
    out_dtype = x.dtype
    orig_shape = x.shape
    k_p, h_p = w1_p.shape
    n_p = w2_p.shape[1]

    x2d = x.reshape(-1, k).astype(cdt)
    m = x2d.shape[0]
    if k_p != k:  # K padding is required for correctness (zero columns inert).
        x2d = jnp.pad(x2d, ((0, 0), (0, k_p - k)))

    wbytes = jnp.dtype(cdt).itemsize
    obytes = jnp.dtype(out_dtype).itemsize
    sub = 16 if wbytes == 2 else 8
    cap = _vmem_cap_bytes()

    # ---- tile selection -----------------------------------------------------
    if tm is None:
        big = cap >= (96 << 20)
        tm_eff = (1024 if big else 512) if wbytes == 2 else (512 if big else 256)
        # Aim for >= 2 M-grid steps so the "parallel" axis can split across
        # both TensorCores on dual-core parts.
        tm_eff = min(tm_eff, _cdiv(m, 2) if m >= 2 * sub else m)
    else:
        tm_eff = tm
    tm_eff = max(sub, _round_up(tm_eff, sub))

    n_lanes = n_p // 128
    if tn is not None and n_p % _round_up(tn, 128) == 0:
        tn_cands = [_round_up(tn, 128)]
    else:
        tn_cands = [d * 128 for d in range(n_lanes, 0, -1) if n_lanes % d == 0]

    tm_floor = max(sub, min(tm_eff, 128))
    sel = None
    for tn_c in tn_cands:            # prefer fully-resident w2 (largest TN)
        t = tm_eff
        while True:
            if _vmem_need(t, tn_c, k_p, h_p, n_p, wbytes, obytes, True) <= cap:
                sel = (t, tn_c)
                break
            if t <= tm_floor:
                break
            t = max(tm_floor, _round_up(t // 2, sub))
        if sel is not None:
            break
    if sel is None:                  # last resort: smallest tiles
        t, tn_c = tm_floor, tn_cands[-1]
        while t > sub and _vmem_need(t, tn_c, k_p, h_p, n_p, wbytes, obytes, True) > cap:
            t = max(sub, _round_up(t // 2, sub))
        sel = (t, tn_c)
    tm_eff, tn_eff = sel

    grid_m = _cdiv(m, tm_eff)
    n_tiles = n_p // tn_eff
    grid = (grid_m, n_tiles)

    need = _vmem_need(tm_eff, tn_eff, k_p, h_p, n_p, wbytes, obytes, True)
    vmem_limit = int(min(cap, max(need + need // 8 + (2 << 20), 24 << 20)))

    w2_reads = w2_p.size * (grid_m if n_tiles > 1 else 1)
    cost = pl.CostEstimate(
        flops=2 * m * (k_p * h_p + h_p * n_p),
        transcendentals=m * h_p,
        bytes_accessed=(x2d.size * wbytes + (w1_p.size + w2_reads) * wbytes
                        + (b1_p.size + b2_p.size) * 4 + m * n_p * obytes),
    )

    if n_tiles == 1:
        kernel = _expert_kernel_fused
        scratch = []
    else:
        kernel = _expert_kernel_ntiled
        scratch = [pltpu.VMEM((tm_eff, h_p), cdt)]

    def build(single_buffer):
        def const2d(shape):  # constant index across the whole grid
            if single_buffer:
                return pl.BlockSpec(shape, lambda i, j: (0, 0),
                                    pipeline_mode=pl.Buffered(1))
            return pl.BlockSpec(shape, lambda i, j: (0, 0))

        def wcol(shape):     # w2 / b2: constant only if N is not tiled
            if single_buffer and n_tiles == 1:
                return pl.BlockSpec(shape, lambda i, j: (0, j),
                                    pipeline_mode=pl.Buffered(1))
            return pl.BlockSpec(shape, lambda i, j: (0, j))

        return pl.pallas_call(
            kernel,
            out_shape=jax.ShapeDtypeStruct((m, n_p), out_dtype),
            grid_spec=pltpu.PrefetchScalarGridSpec(
                num_scalar_prefetch=0,
                grid=grid,
                in_specs=[
                    pl.BlockSpec((tm_eff, k_p), lambda i, j: (i, 0)),  # x
                    const2d((k_p, h_p)),                               # w1
                    const2d((1, h_p)),                                 # b1
                    wcol((h_p, tn_eff)),                               # w2
                    wcol((1, tn_eff)),                                 # b2
                ],
                out_specs=pl.BlockSpec((tm_eff, tn_eff), lambda i, j: (i, j)),
                scratch_shapes=scratch,
            ),
            compiler_params=pltpu.CompilerParams(
                dimension_semantics=("parallel", "arbitrary"),
                vmem_limit_bytes=vmem_limit,
            ),
            cost_estimate=cost,
        )

    try:
        out = build(True)(x2d, w1_p, b1_p, w2_p, b2_p)
    except Exception:
        # pipeline_mode=pl.Buffered(1) not supported on this jax build:
        # retry with default (double) buffering.
        out = build(False)(x2d, w1_p, b1_p, w2_p, b2_p)

    if n_p != n:
        out = out[:, :n]
    return out.reshape(orig_shape[:-1] + (n,))


# ----------------------------- reference / init -----------------------------


def init_expert_params(key, input_size, output_size, hidden_size, low_rank=1,
                       dtype=jnp.float32):
    """Deterministic init mirroring nn.Linear default (uniform +/- 1/sqrt(fan_in))."""
    h = int(hidden_size // low_rank)
    k1, k2, k3, k4 = jax.random.split(key, 4)
    bound1 = 1.0 / math.sqrt(input_size)
    bound2 = 1.0 / math.sqrt(h)
    # stored already transposed: [in, out]
    w1 = jax.random.uniform(k1, (input_size, h), dtype, -bound1, bound1)
    b1 = jax.random.uniform(k2, (1, h), dtype, -bound1, bound1)
    w2 = jax.random.uniform(k3, (h, output_size), dtype, -bound2, bound2)
    b2 = jax.random.uniform(k4, (1, output_size), dtype, -bound2, bound2)
    return w1, b1, w2, b2


def expert_reference(x, w1, b1, w2, b2):
    h = x @ w1 + b1[0]
    g = 0.5 * h * (1.0 + lax.erf(h / math.sqrt(2.0)))
    return g @ w2 + b2[0]


if __name__ == "__main__":
    key = jax.random.PRNGKey(0)
    kx1, kp1, kx2, kp2 = jax.random.split(key, 4)

    # ---- Test 1: small shapes, fully-resident weights ----
    input_size, hidden_size, output_size = 32, 32, 32
    batch, seq = 2, 8
    x = jax.random.normal(kx1, (batch, seq, input_size), jnp.float32)
    w1, b1, w2, b2 = init_expert_params(kp1, input_size, output_size, hidden_size)
    y_ref = expert_reference(x.reshape(-1, input_size), w1, b1, w2, b2).reshape(
        batch, seq, output_size)

    # Exact f32 path (tight tolerance).
    p_f32 = prepare_expert_params(w1, b1, w2, b2, compute_dtype=jnp.float32)
    y_f32 = jax.block_until_ready(expert_forward(x, p_f32))
    assert y_f32.shape == (batch, seq, output_size)
    assert jnp.allclose(y_f32, y_ref, atol=1e-5, rtol=1e-5)

    # Default bf16 MXU path (f32 accumulation), looser tolerance.
    p_bf16 = prepare_expert_params(w1, b1, w2, b2)
    y_bf16 = jax.block_until_ready(expert_forward(x, p_bf16))
    assert y_bf16.shape == (batch, seq, output_size)
    assert jnp.allclose(y_bf16, y_ref, atol=1e-1, rtol=1e-1)

    # ---- Test 2: exercise the N-tiled path + partial M tile (forced tiles) --
    in2, hid2, out2 = 64, 96, 320
    batch2, seq2 = 2, 40
    x2 = jax.random.normal(kx2, (batch2, seq2, in2), jnp.float32)
    w1b, b1b, w2b, b2b = init_expert_params(kp2, in2, out2, hid2)
    y2_ref = expert_reference(x2.reshape(-1, in2), w1b, b1b, w2b, b2b).reshape(
        batch2, seq2, out2)
    p2 = prepare_expert_params(w1b, b1b, w2b, b2b)
    y2 = jax.block_until_ready(expert_forward(x2, p2, tm=32, tn=128))
    assert y2.shape == (batch2, seq2, out2)
    assert jnp.allclose(y2, y2_ref, atol=1e-1, rtol=1e-1)

    print("KERNEL_OK")
</pallas_src>

<mosaic_0001>
module attributes {stable_mosaic.version = 11 : i64} {
  func.func @_expert_kernel_fused(%arg0: i32, %arg1: i32, %arg2: memref<8x128xf32, #tpu.memory_space<vmem>>, %arg3: memref<128x128xf32, #tpu.memory_space<vmem>>, %arg4: memref<1x128xf32, #tpu.memory_space<vmem>>, %arg5: memref<128x128xf32, #tpu.memory_space<vmem>>, %arg6: memref<1x128xf32, #tpu.memory_space<vmem>>, %arg7: memref<8x128xf32, #tpu.memory_space<vmem>>) attributes {dimension_semantics = [#tpu.dimension_semantics<parallel>, #tpu.dimension_semantics<arbitrary>], iteration_bounds = array<i64: 2, 1>, scalar_prefetch = 0 : i64, scratch_operands = 0 : i64, tpu.core_type = #tpu.core_type<tc>, window_params = [{transform_indices = @transform_0, window_bounds = array<i64: 8, 128>}, {pipeline_mode = #tpu.pipeline_mode<synchronous>, transform_indices = @transform_1, window_bounds = array<i64: 128, 128>}, {pipeline_mode = #tpu.pipeline_mode<synchronous>, transform_indices = @transform_2, window_bounds = array<i64: 1, 128>}, {pipeline_mode = #tpu.pipeline_mode<synchronous>, transform_indices = @transform_3, window_bounds = array<i64: 128, 128>}, {pipeline_mode = #tpu.pipeline_mode<synchronous>, transform_indices = @transform_4, window_bounds = array<i64: 1, 128>}, {transform_indices = @transform_5, window_bounds = array<i64: 8, 128>}]} {
    %c0 = arith.constant 0 : index
    %c0_0 = arith.constant 0 : index
    %0 = vector.load %arg2[%c0, %c0_0] : memref<8x128xf32, #tpu.memory_space<vmem>>, vector<8x128xf32>
    %c0_1 = arith.constant 0 : index
    %c0_2 = arith.constant 0 : index
    %1 = vector.load %arg3[%c0_1, %c0_2] : memref<128x128xf32, #tpu.memory_space<vmem>>, vector<128x128xf32>
    %cst = arith.constant dense<0.000000e+00> : vector<8x128xf32>
    %2 = tpu.matmul %0, %1, %cst {dimension_numbers = #tpu.dot_dimension_numbers<[1], [0], [0], [1], [0, 0, 1, 1], [], []>} : vector<8x128xf32>, vector<128x128xf32>, vector<8x128xf32> -> vector<8x128xf32>
    %c0_3 = arith.constant 0 : index
    %c0_4 = arith.constant 0 : index
    %3 = vector.load %arg4[%c0_3, %c0_4] : memref<1x128xf32, #tpu.memory_space<vmem>>, vector<1x128xf32>
    %4 = vector.broadcast %3 : vector<1x128xf32> to vector<8x128xf32>
    %5 = arith.addf %2, %4 : vector<8x128xf32>
    %cst_5 = arith.constant 5.000000e-01 : f32
    %6 = vector.broadcast %cst_5 : f32 to vector<8x128xf32>
    %7 = arith.mulf %6, %5 : vector<8x128xf32>
    %cst_6 = arith.constant 0.707106769 : f32
    %8 = vector.broadcast %cst_6 : f32 to vector<8x128xf32>
    %9 = arith.mulf %5, %8 : vector<8x128xf32>
    %10 = math.erf %9 : vector<8x128xf32>
    %cst_7 = arith.constant 1.000000e+00 : f32
    %11 = vector.broadcast %cst_7 : f32 to vector<8x128xf32>
    %12 = arith.addf %11, %10 : vector<8x128xf32>
    %13 = arith.mulf %7, %12 : vector<8x128xf32>
    %c0_8 = arith.constant 0 : index
    %c0_9 = arith.constant 0 : index
    %14 = vector.load %arg5[%c0_8, %c0_9] : memref<128x128xf32, #tpu.memory_space<vmem>>, vector<128x128xf32>
    %cst_10 = arith.constant dense<0.000000e+00> : vector<8x128xf32>
    %15 = tpu.matmul %13, %14, %cst_10 {dimension_numbers = #tpu.dot_dimension_numbers<[1], [0], [0], [1], [0, 0, 1, 1], [], []>} : vector<8x128xf32>, vector<128x128xf32>, vector<8x128xf32> -> vector<8x128xf32>
    %c0_11 = arith.constant 0 : index
    %c0_12 = arith.constant 0 : index
    %16 = vector.load %arg6[%c0_11, %c0_12] : memref<1x128xf32, #tpu.memory_space<vmem>>, vector<1x128xf32>
    %17 = vector.broadcast %16 : vector<1x128xf32> to vector<8x128xf32>
    %18 = arith.addf %15, %17 : vector<8x128xf32>
    %c0_13 = arith.constant 0 : index
    %c0_14 = arith.constant 0 : index
    %19 = vector.load %arg7[%c0_13, %c0_14] : memref<8x128xf32, #tpu.memory_space<vmem>>, vector<8x128xf32>
    tpu.vector_store %arg7[%c0_13, %c0_14], %18 {strides = array<i32>} : memref<8x128xf32, #tpu.memory_space<vmem>>, vector<8x128xf32>,
    return
  }
  func.func @transform_0(%arg0: i32, %arg1: i32) -> (i32, i32) {
    %c0_i32 = arith.constant 0 : i32
    %c0_i32_0 = arith.constant 0 : i32
    return %arg0, %c0_i32 : i32, i32
  }
  func.func @transform_1(%arg0: i32, %arg1: i32) -> (i32, i32) {
    %c0_i32 = arith.constant 0 : i32
    %c0_i32_0 = arith.constant 0 : i32
    %c0_i32_1 = arith.constant 0 : i32
    return %c0_i32, %c0_i32_0 : i32, i32
  }
  func.func @transform_2(%arg0: i32, %arg1: i32) -> (i32, i32) {
    %c0_i32 = arith.constant 0 : i32
    %c0_i32_0 = arith.constant 0 : i32
    %c0_i32_1 = arith.constant 0 : i32
    return %c0_i32, %c0_i32_0 : i32, i32
  }
  func.func @transform_3(%arg0: i32, %arg1: i32) -> (i32, i32) {
    %c0_i32 = arith.constant 0 : i32
    %c0_i32_0 = arith.constant 0 : i32
    return %c0_i32, %arg1 : i32, i32
  }
  func.func @transform_4(%arg0: i32, %arg1: i32) -> (i32, i32) {
    %c0_i32 = arith.constant 0 : i32
    %c0_i32_0 = arith.constant 0 : i32
    return %c0_i32, %arg1 : i32, i32
  }
  func.func @transform_5(%arg0: i32, %arg1: i32) -> (i32, i32) {
    %c0_i32 = arith.constant 0 : i32
    return %arg0, %arg1 : i32, i32
  }
}

module attributes {stable_mosaic.version = 11 : i64} {
  func.func @_expert_kernel_fused(%arg0: i32, %arg1: i32, %arg2: memref<8x128xf32, #tpu.memory_space<vmem>>, %arg3: memref<128x128xf32, #tpu.memory_space<vmem>>, %arg4: memref<1x128xf32, #tpu.memory_space<vmem>>, %arg5: memref<128x128xf32, #tpu.memory_space<vmem>>, %arg6: memref<1x128xf32, #tpu.memory_space<vmem>>, %arg7: memref<8x128xf32, #tpu.memory_space<vmem>>) attributes {dimension_semantics = [#tpu.dimension_semantics<parallel>, #tpu.dimension_semantics<arbitrary>], iteration_bounds = array<i64: 2, 1>, scalar_prefetch = 0 : i64, scratch_operands = 0 : i64, tpu.core_type = #tpu.core_type<tc>, window_params = [{transform_indices = @transform_0, window_bounds = array<i64: 8, 128>}, {pipeline_mode = #tpu.pipeline_mode<synchronous>, transform_indices = @transform_1, window_bounds = array<i64: 128, 128>}, {pipeline_mode = #tpu.pipeline_mode<synchronous>, transform_indices = @transform_2, window_bounds = array<i64: 1, 128>}, {transform_indices = @transform_3, window_bounds = array<i64: 128, 128>}, {transform_indices = @transform_4, window_bounds = array<i64: 1, 128>}, {transform_indices = @transform_5, window_bounds = array<i64: 8, 128>}]} {
    %c0 = arith.constant 0 : index
    %c0_0 = arith.constant 0 : index
    %0 = vector.load %arg2[%c0, %c0_0] : memref<8x128xf32, #tpu.memory_space<vmem>>, vector<8x128xf32>
    %c0_1 = arith.constant 0 : index
    %c0_2 = arith.constant 0 : index
    %1 = vector.load %arg3[%c0_1, %c0_2] : memref<128x128xf32, #tpu.memory_space<vmem>>, vector<128x128xf32>
    %cst = arith.constant dense<0.000000e+00> : vector<8x128xf32>
    %2 = tpu.matmul %0, %1, %cst {dimension_numbers = #tpu.dot_dimension_numbers<[1], [0], [0], [1], [0, 0, 1, 1], [], []>} : vector<8x128xf32>, vector<128x128xf32>, vector<8x128xf32> -> vector<8x128xf32>
    %c0_3 = arith.constant 0 : index
    %c0_4 = arith.constant 0 : index
    %3 = vector.load %arg4[%c0_3, %c0_4] : memref<1x128xf32, #tpu.memory_space<vmem>>, vector<1x128xf32>
    %4 = vector.broadcast %3 : vector<1x128xf32> to vector<8x128xf32>
    %5 = arith.addf %2, %4 : vector<8x128xf32>
    %cst_5 = arith.constant 5.000000e-01 : f32
    %6 = vector.broadcast %cst_5 : f32 to vector<8x128xf32>
    %7 = arith.mulf %6, %5 : vector<8x128xf32>
    %cst_6 = arith.constant 0.707106769 : f32
    %8 = vector.broadcast %cst_6 : f32 to vector<8x128xf32>
    %9 = arith.mulf %5, %8 : vector<8x128xf32>
    %10 = math.erf %9 : vector<8x128xf32>
    %cst_7 = arith.constant 1.000000e+00 : f32
    %11 = vector.broadcast %cst_7 : f32 to vector<8x128xf32>
    %12 = arith.addf %11, %10 : vector<8x128xf32>
    %13 = arith.mulf %7, %12 : vector<8x128xf32>
    %c0_8 = arith.constant 0 : index
    %c0_9 = arith.constant 0 : index
    %14 = vector.load %arg5[%c0_8, %c0_9] : memref<128x128xf32, #tpu.memory_space<vmem>>, vector<128x128xf32>
    %cst_10 = arith.constant dense<0.000000e+00> : vector<8x128xf32>
    %15 = tpu.matmul %13, %14, %cst_10 {dimension_numbers = #tpu.dot_dimension_numbers<[1], [0], [0], [1], [0, 0, 1, 1], [], []>} : vector<8x128xf32>, vector<128x128xf32>, vector<8x128xf32> -> vector<8x128xf32>
    %c0_11 = arith.constant 0 : index
    %c0_12 = arith.constant 0 : index
    %16 = vector.load %arg6[%c0_11, %c0_12] : memref<1x128xf32, #tpu.memory_space<vmem>>, vector<1x128xf32>
    %17 = vector.broadcast %16 : vector<1x128xf32> to vector<8x128xf32>
    %18 = arith.addf %15, %17 : vector<8x128xf32>
    %c0_13 = arith.constant 0 : index
    %c0_14 = arith.constant 0 : index
    %19 = vector.load %arg7[%c0_13, %c0_14] : memref<8x128xf32, #tpu.memory_space<vmem>>, vector<8x128xf32>
    tpu.vector_store %arg7[%c0_13, %c0_14], %18 {strides = array<i32>} : memref<8x128xf32, #tpu.memory_space<vmem>>, vector<8x128xf32>,
    return
  }
  func.func @transform_0(%arg0: i32, %arg1: i32) -> (i32, i32) {
    %c0_i32 = arith.constant 0 : i32
    %c0_i32_0 = arith.constant 0 : i32
    return %arg0, %c0_i32 : i32, i32
  }
  func.func @transform_1(%arg0: i32, %arg1: i32) -> (i32, i32) {
    %c0_i32 = arith.constant 0 : i32
    %c0_i32_0 = arith.constant 0 : i32
    %c0_i32_1 = arith.constant 0 : i32
    return %c0_i32, %c0_i32_0 : i32, i32
  }
  func.func @transform_2(%arg0: i32, %arg1: i32) -> (i32, i32) {
    %c0_i32 = arith.constant 0 : i32
    %c0_i32_0 = arith.constant 0 : i32
    %c0_i32_1 = arith.constant 0 : i32
    return %c0_i32, %c0_i32_0 : i32, i32
  }
  func.func @transform_3(%arg0: i32, %arg1: i32) -> (i32, i32) {
    %c0_i32 = arith.constant 0 : i32
    %c0_i32_0 = arith.constant 0 : i32
    return %c0_i32, %arg1 : i32, i32
  }
  func.func @transform_4(%arg0: i32, %arg1: i32) -> (i32, i32) {
    %c0_i32 = arith.constant 0 : i32
    %c0_i32_0 = arith.constant 0 : i32
    return %c0_i32, %arg1 : i32, i32
  }
  func.func @transform_5(%arg0: i32, %arg1: i32) -> (i32, i32) {
    %c0_i32 = arith.constant 0 : i32
    return %arg0, %arg1 : i32, i32
  }
}

</mosaic_0001>

<bundles_post_ra>
// kernel: tpu_custom_call.1
= control target key start
LH: loop header
LB: loop body
LE: loop exit
PB: predicated region body
PF: predicated region fallthrough
CT: control target
= control target key end

     0   :  { %10 = vsyncpa [#allocation3], 0  ;;  %s1378_s0 = inlined_call_operand.hbm [shape: f32[16,128], index: 0, kind: input, shape index: {}]   ;;  %s1379_s1 = inlined_call_operand.hbm [shape: f32[128,128], index: 1, kind: input, shape index: {}]   ;;  %s1380_s2 = inlined_call_operand.vmem [shape: f32[1,128], index: 2, kind: input, shape index: {}]   ;;  %s1381_s3 = inlined_call_operand.hbm [shape: f32[128,128], index: 3, kind: input, shape index: {}]   ;;  %s1382_s4 = inlined_call_operand.vmem [shape: f32[1,128], index: 4, kind: input, shape index: {}]   ;;  %s1383_s5 = inlined_call_operand.hbm [shape: f32[16,128], index: 5, kind: output, shape index: {}]  }
   0x1   :  { %12 = vsyncpa [#allocation3 + $0x1], 0 }
   0x2   :  { %13 = vsyncpa [#allocation6], 0 }
   0x3   :  { %14 = vsyncpa [#allocation4], 0 }
   0x4   :  { %16 = vsyncpa [#allocation4 + $0x1], 0  ;;  %s1099_s18 = smov 0   ;;  %s1101_s19 = smov 0  }
   0x5   :  { %s1103_s20 = smov 0   ;;  %s1105_s21 = smov 0  }
   0x6   :  { %s1107_s22 = smov 0   ;;  %s1109_s23 = smov 0  }
   0x7 LB: > { %s624_s24 = sadd.s32 4294967295, %s1058_s23   ;;  %s625_s25 = sadd.s32 4294967294, %s1058_s23   ;;  %s1058_s23 = sphi %s1109_s23, %s22_s23   ;;  %s1054_s22 = sphi %s1107_s22, %s1405_s22   ;;  %s1050_s21 = sphi %s1105_s21, %s1404_s21   ;;  %s1046_s20 = sphi %s1103_s20, %s1403_s20   ;;  %s1042_s19 = sphi %s1101_s19, %s1402_s19   ;;  %s1038_s18 = sphi %s1099_s18, %s1401_s18  }
   0x8   : > { %p54_p0 = scmp.ne.s32.totalorder %s1042_s19, %s1038_s18  ;;  %p1133_p1 = scmp.eq.s32.totalorder %s624_s24, 0 }
   0x9   : > { %p1137_p2 = scmp.eq.s32.totalorder %s624_s24, 1  ;;  %p180_p3 = scmp.eq.s32.totalorder %s625_s25, 1 }
   0xa   : > { %s1388_s26 = scalar_select %p1133_p1, 1, 0 }
   0xb   : > { %p1143_p4 = por %p1133_p1, %p54_p0  ;;  %p626_p5 = scmp.ge.s32.totalorder %s1058_s23, 1 }
   0xc   : > { %p1148_p6 = por %p180_p3, %p54_p0  ;;  %p187_p7 = scmp.lt.s32.totalorder %s1058_s23, 3 }
   0xd   : > { %s1390_s28 = scalar_select %p1143_p4, 1, 0 }
   0xe   : > { %s1391_s29 = scalar_select %p1148_p6, 1, 0 }
   0xf   : > { %p1153_p8 = pnand %p626_p5, %p187_p7  ;;  %s1060_s6 = smov [#allocation5]  }
  0x10   : > { %s199_s7 = sshll.u32 %s1060_s6, 4  ;;  %s1061_s9 = smov [#allocation7]   ;;  %s1157_s7 = int_to_ptr.vmem [resolvable:$true] %s199_s7 }
  0x11   : > { %p808_p9 = pneg %p1153_p8  ;;  %s217_s10 = sshll.u32 %s1061_s9, 4  ;;  %s1168_s10 = int_to_ptr.vmem [resolvable:$true] %s217_s10 }
  0x12   : > { %s886_s13 = scalar_lea.hbm %s1379_s1, 2048 }
  0x13   : > { %p1164_p11 = pnand %p808_p9, %p1133_p1  ;;  %p887_p12 = scmp.ne.s32.totalorder %s1379_s1, %s886_s13 }
  0x14   : > { %p893_p5 = scmp.lt.u32.totalorder %s886_s13, %s1379_s1 }
  0x15   : > { %p888_p13 = pneg %p1164_p11 }
  0x17   : > { %p889_p0 = pnand %p888_p13, %p887_p12 }
  0x19   : > { %p890_p3 = pneg %p889_p0 }
  0x1b   : > { %p895_p7 = pnand %p893_p5, %p890_p3 }
  0x1d   : > { %898 = shalt.err (!%p895_p7)
}
  0x1e   : > { %s899_s24 = scalar_lea.vmem %s1157_s7, 2048  ;;  %p907_p1 = scmp.lt.s32.totalorder %s1157_s7, %s1157_s7 }
  0x1f   : > { %p900_p9 = scmp.ne.s32.totalorder %s1157_s7, %s899_s24  ;;  %p908_p12 = scmp.lt.s32.totalorder %s899_s24, %s899_s24 }
  0x21   : > { %p902_p10 = pnand %p900_p9, %p888_p13  ;;  %p909_p0 = por %p908_p12, %p907_p1 }
  0x23   : > { %p903_p6 = pneg %p902_p10 }
  0x25   : > { %p910_p4 = pnand %p909_p0, %p903_p6 }
  0x27   : > { %913 = shalt.err (!%p910_p4)
}
  0x28   : > { %s1062_s25 = smov 128   ;;  %s1063_s6 = smov 8  }
  0x29   : > { %811 = dma.hbm_to_vmem [thread:$0]  (!%p1164_p11), %s1379_s1, 2048, %s1157_s7, [#allocation6], %s1062_s25, %s1062_s25, %s1063_s6  }
  0x2a   : > { %s914_s14 = scalar_lea.hbm %s1381_s3, 2048 }
  0x2b   : > { %p915_p1 = scmp.ne.s32.totalorder %s1381_s3, %s914_s14  ;;  %p921_p10 = scmp.lt.u32.totalorder %s914_s14, %s1381_s3 }
  0x2d   : > { %p917_p4 = pnand %p915_p1, %p888_p13 }
  0x2f   : > { %p918_p6 = pneg %p917_p4 }
  0x31   : > { %p923_p3 = pnand %p921_p10, %p918_p6 }
  0x33   : > { %926 = shalt.err (!%p923_p3)
}
  0x34   : > { %s927_s7 = scalar_lea.vmem %s1168_s10, 2048  ;;  %p935_p12 = scmp.lt.s32.totalorder %s1168_s10, %s1168_s10 }
  0x35   : > { %p928_p5 = scmp.ne.s32.totalorder %s1168_s10, %s927_s7  ;;  %p936_p0 = scmp.lt.s32.totalorder %s927_s7, %s927_s7 }
  0x37   : > { %p930_p7 = pnand %p928_p5, %p888_p13  ;;  %p937_p1 = por %p936_p0, %p935_p12 }
  0x39   : > { %p931_p9 = pneg %p930_p7 }
  0x3b   : > { %p938_p4 = pnand %p937_p1, %p931_p9 }
  0x3d   : > { %941 = shalt.err (!%p938_p4)
}
  0x3e   : > { %814 = dma.hbm_to_vmem [thread:$0]  (!%p1164_p11), %s1381_s3, 2048, %s1168_s10, [#allocation6], %s1062_s25, %s1062_s25, %s1063_s6  }
  0x3f   : > { %s34_s12 = sadd.s32 1, %s1054_s22  ;;  %s41_s13 = sadd.s32 1, %s1046_s20 }
  0x40   : > { %p36_p13 = scmp.ge.s32.totalorder %s34_s12, 2  ;;  %p48_p6 = scmp.ne.s32.totalorder %s1046_s20, %s1042_s19 }
  0x41   : > { %p49_p10 = scmp.eq.s32.totalorder %s1058_s23, 0  ;;  %p825_p3 = scmp.lt.s32.totalorder %s1058_s23, 2 }
  0x42   : > { %s1407_s12 = smov (%p36_p13, %s34_s12), 0  ;;  %p1232_p7 = por %p1137_p2, %p48_p6 }
  0x43   : > { %p50_p5 = por %p49_p10, %p48_p6  ;;  %s38_s14 = ssub.s32 %s1054_s22, %s1407_s12 }
  0x44   : > { %s1394_s8 = scalar_select %p1232_p7, 1, 0 }
  0x45   : > { %s237_s15 = sand.u32 1, %s1046_s20   ;;  %p39_p9 = scmp.eq.s32.totalorder %s38_s14, 0 }
  0x46   : > { %s631_s10 = sshll.u32 %s237_s15, 3  ;;  %s632_s25 = sshll.u32 %s1054_s22, 7 }
  0x47   : > { %s1241_s6 = scalar_select %p39_p9, %s1046_s20, %s41_s13  }
  0x48   : > { %s1246_s24 = scalar_lea.hbm %s1378_s0, %s632_s25  ;;  %s241_s27 = scalar_lea.vmem [#allocation2], %s631_s10 }
  0x49   : > { %s248_s7 = sshll.u32 %s241_s27, 4  ;;  %p1250_p2 = pnand %p825_p3, %p50_p5  ;;  %s1254_s7 = int_to_ptr.vmem [resolvable:$true] %s248_s7 }
  0x4a   : > { %s238_s11 = scalar_lea.sflag [#allocation3], %s237_s15  ;;  %s942_s13 = scalar_lea.hbm %s1246_s24, 128 }
  0x4b   : > { %p943_p11 = scmp.ne.s32.totalorder %s1246_s24, %s942_s13  ;;  %p944_p12 = pneg %p1250_p2 }
  0x4c   : > { %s947_s25 = scalar_lea.hbm %s1378_s0, 256  ;;  %p948_p4 = scmp.lt.u32.totalorder %s1246_s24, %s1378_s0 }
  0x4d   : > { %p945_p0 = pnand %p944_p12, %p943_p11  ;;  %p949_p13 = scmp.lt.u32.totalorder %s947_s25, %s942_s13 }
  0x4e   : > { %p951_p10 = scmp.lt.u32.totalorder %s942_s13, %s1246_s24 }
  0x4f   : > { %p946_p1 = pneg %p945_p0  ;;  %p950_p6 = por %p949_p13, %p948_p4 }
  0x51   : > { %p952_p3 = por %p951_p10, %p950_p6 }
  0x53   : > { %p953_p5 = pnand %p952_p3, %p946_p1 }
  0x55   : > { %956 = shalt.err (!%p953_p5)
}
  0x56   : > { %s957_s15 = scalar_lea.vmem %s1254_s7, 128  ;;  %s1064_s27 = smov [#allocation2]  }
  0x57   : > { %p958_p9 = scmp.ne.s32.totalorder %s1254_s7, %s957_s15  ;;  %s962_s14 = sshll.u32 %s1064_s27, 4  ;;  %s963_s14 = int_to_ptr.vmem [resolvable:$false] %s962_s14 }
  0x58   : > { %s964_s10 = scalar_lea.vmem %s963_s14, 256  ;;  %p965_p7 = scmp.lt.s32.totalorder %s1254_s7, %s963_s14 }
  0x59   : > { %p960_p11 = pnand %p958_p9, %p944_p12  ;;  %p966_p4 = scmp.lt.s32.totalorder %s964_s10, %s957_s15 }
  0x5b   : > { %p961_p0 = pneg %p960_p11  ;;  %p967_p13 = por %p966_p4, %p965_p7 }
  0x5d   : > { %p968_p6 = pnand %p967_p13, %p961_p0 }
  0x5f   : > { %971 = shalt.err (!%p968_p6)
}
  0x60   : > { %818 = dma.hbm_to_vmem [thread:$0]  (!%p1250_p2), %s1246_s24, 128, %s1254_s7, %s238_s11  }
  0x61   : > { %257 = sbr.rel (%p1153_p8) target bundleno = 602 (0x25a), region = 40  ;;  %s1284_s13 = sand.u32 (!%p1153_p8), 1, %s1042_s19  }
  0x62   : > { %s634_s25 = sshll.u32 (!%p1153_p8), %s1284_s13, 3  ;;  %s260_s16 = scalar_lea.sflag (!%p1153_p8), [#allocation3], %s1284_s13 }
  0x63   : > { %s1290_s17 = scalar_lea.vmem (!%p1153_p8), [#allocation2], %s634_s25  ;;  %p1396_p7 = scmp.ne.s32.totalorder (!%p1153_p8), %s1390_s28, 0 }
  0x68   : > { %1025 = dma.done.wait (%p1396_p7), %s260_s16, 128  }
  0x69   : > { %1027 = vsyncadd (%p1396_p7), %s260_s16, 4294967168  ;;  %p1397_p2 = scmp.ne.s32.totalorder %s1388_s26, 0 }
  0x6b   : > { %1029 = dma.done.wait (%p1397_p2), [#allocation6], 4096  }
  0x6c   : > { %1031 = vsyncadd (%p1397_p2), [#allocation6], 4294963200  ;;  %v1065_v0 = vmov 0.0|0.0   ;;  %vm1066_vm0 = vmmov 0   ;;  %v1067_v1 = vmov 0.0   ;;  %v305_v2 = vld [vmem:[#allocation5] sm:$0xff] }
  0x6d   : > { %748 = vmatprep.subr.bf16.mxu0 %v1065_v0  ;;  %710 = vmatprep.mubr.msk.f32.mxu0 %vm1066_vm0, %v1067_v1  ;;  %v306_v3 = vld [vmem:[#allocation5 + $0x8] sm:$0xff]  ;;  %v307_v4 = vld [vmem:[#allocation5 + $0x10] sm:$0xff]  ;;  %v308_v6 = vld [vmem:[#allocation5 + $0x18] sm:$0xff]  ;;  %s641_s7 = sshll.u32 %s1050_s21, 7  ;;  %s300_s9 = scalar_lea.vmem [#allocation8], %s634_s25 }
  0x6e   : > { %772 = vmatprep.subr.bf16.mxu1 %v1065_v0  ;;  %745 = vmatprep.mubr.msk.f32.mxu1 %vm1066_vm0, %v1067_v1  ;;  %v749_v5 = vpack.c.bf16 %v306_v3, %v305_v2  ;;  %v752_v7 = vpack.c.bf16 %v308_v6, %v307_v4  ;;  %v309_v8 = vld [vmem:[#allocation5 + $0x20] sm:$0xff]  ;;  %v310_v9 = vld [vmem:[#allocation5 + $0x28] sm:$0xff]  ;;  %v405_v12 = vld [vmem:[#allocation7 + $0x10] sm:$0xff]  ;;  %s512_s11 = sshll.u32 %s300_s9, 4  ;;  %s1329_s14 = scalar_lea.hbm %s1383_s5, %s641_s7  ;;  %s1331_s11 = int_to_ptr.vmem [resolvable:$true] %s512_s11 }
  0x6f   : > { %v403_v10 = vld [vmem:[#allocation7] sm:$0xff]  ;;  %v404_v11 = vld [vmem:[#allocation7 + $0x8] sm:$0xff]  ;;  %v406_v13 = vld [vmem:[#allocation7 + $0x18] sm:$0xff]  ;;  %v755_v14 = vpack.c.bf16 %v310_v9, %v309_v8  ;;  %s498_s10 = scalar_lea.sflag [#allocation4], %s1284_s13  ;;  %s972_s16 = scalar_lea.vmem %s1331_s11, 128 }
  0x70   : > { %750 = vmatpush3.bf16.msra.mxu0 %v749_v5  ;;  %v773_v15 = vpack.c.bf16 %v404_v11, %v403_v10  ;;  %v311_v16 = vld [vmem:[#allocation5 + $0x30] sm:$0xff]  ;;  %v312_v17 = vld [vmem:[#allocation5 + $0x38] sm:$0xff]  ;;  %v776_v18 = vpack.c.bf16 %v406_v13, %v405_v12  ;;  %v407_v19 = vld [vmem:[#allocation7 + $0x20] sm:$0xff]  ;;  %p973_p8 = scmp.ne.s32.totalorder %s1331_s11, %s972_s16  ;;  %p1398_p12 = scmp.ne.s32.totalorder %s1394_s8, 0 }
  0x71   : > { %751 = vmatprep.subr.bf16.mxu0 %v1065_v0  ;;  %v408_v20 = vld [vmem:[#allocation7 + $0x28] sm:$0xff]  ;;  %v758_v21 = vpack.c.bf16 %v312_v17, %v311_v16  ;;  %v313_v22 = vld [vmem:[#allocation5 + $0x40] sm:$0xff]  ;;  %v315_v26 = vld [vmem:[#allocation5 + $0x50] sm:$0xff]  ;;  %s1068_s21 = smov [#allocation8]  }
  0x72   : > { %774 = vmatpush3.bf16.msra.mxu1 %v773_v15  ;;  %v314_v23 = vld [vmem:[#allocation5 + $0x48] sm:$0xff]  ;;  %v779_v24 = vpack.c.bf16 %v408_v20, %v407_v19  ;;  %v316_v27 = vld [vmem:[#allocation5 + $0x58] sm:$0xff]  ;;  %v317_v29 = vld [vmem:[#allocation5 + $0x60] sm:$0xff]  ;;  %p974_p1 = pnand %p973_p8, %p1398_p12  ;;  %s976_s25 = sshll.u32 %s1068_s21, 4  ;;  %s977_s25 = int_to_ptr.vmem [resolvable:$false] %s976_s25 }
  0x73   : > { %775 = vmatprep.subr.bf16.mxu1 %v1065_v0  ;;  %v761_v25 = vpack.c.bf16 %v314_v23, %v313_v22  ;;  %v764_v28 = vpack.c.bf16 %v316_v27, %v315_v26  ;;  %v318_v30 = vld [vmem:[#allocation5 + $0x68] sm:$0xff]  ;;  %v319_v32 = vld [vmem:[#allocation5 + $0x70] sm:$0xff]  ;;  %v320_v33 = vld [vmem:[#allocation5 + $0x78] sm:$0xff]  ;;  %p979_p3 = scmp.lt.s32.totalorder %s1331_s11, %s977_s25 }
  0x74   : > { %753 = vmatpush3.bf16.msra.mxu0 %v752_v7  ;;  %v767_v31 = vpack.c.bf16 %v318_v30, %v317_v29  ;;  %v770_v34 = vpack.c.bf16 %v320_v33, %v319_v32  ;;  %v304_v35 = vld [vmem:[%s1290_s17] sm:$0xff]  ;;  %v411_v39 = vld [vmem:[#allocation7 + $0x40] sm:$0xff]  ;;  %v412_v40 = vld [vmem:[#allocation7 + $0x48] sm:$0xff]  ;;  %p975_p10 = pneg %p974_p1  ;;  %s978_s17 = scalar_lea.vmem %s977_s25, 256 }
  0x75   : > { %754 = vmatprep.subr.bf16.mxu0 %v1065_v0  ;;  %v409_v36 = vld [vmem:[#allocation7 + $0x30] sm:$0xff]  ;;  %v410_v37 = vld [vmem:[#allocation7 + $0x38] sm:$0xff]  ;;  %v785_v41 = vpack.c.bf16 %v412_v40, %v411_v39  ;;  %v415_v45 = vld [vmem:[#allocation7 + $0x60] sm:$0xff]  ;;  %p980_p5 = scmp.lt.s32.totalorder %s978_s17, %s972_s16 }
  0x76   : > { %777 = vmatpush3.bf16.msra.mxu1 %v776_v18  ;;  %v782_v38 = vpack.c.bf16 %v410_v37, %v409_v36  ;;  %v413_v42 = vld [vmem:[#allocation7 + $0x50] sm:$0xff]  ;;  %v414_v43 = vld [vmem:[#allocation7 + $0x58] sm:$0xff]  ;;  %v416_v46 = vld [vmem:[#allocation7 + $0x68] sm:$0xff] }
  0x77   : > { %778 = vmatprep.subr.bf16.mxu1 %v1065_v0  ;;  %v788_v44 = vpack.c.bf16 %v414_v43, %v413_v42  ;;  %v791_v47 = vpack.c.bf16 %v416_v46, %v415_v45  ;;  %v417_v48 = vld [vmem:[#allocation7 + $0x70] sm:$0xff]  ;;  %v418_v49 = vld [vmem:[#allocation7 + $0x78] sm:$0xff]  ;;  %p981_p9 = por %p980_p5, %p979_p3 }
  0x78   : > { %756 = vmatpush3.bf16.msra.mxu0 %v755_v14  ;;  %v794_v50 = vpack.c.bf16 %v418_v49, %v417_v48  ;;  %v638_v51 = vld [vmem:[%s1380_s2] ss:$0 sm:$0xff] }
  0x79   : > { %757 = vmatprep.subr.bf16.mxu0 %v1065_v0  ;;  %v639_v60 = vld [vmem:[%s1382_s4] ss:$0 sm:$0xff]  ;;  %p982_p11 = pnand %p981_p9, %p975_p10 }
  0x7a   : > { %780 = vmatpush3.bf16.msra.mxu1 %v779_v24 }
  0x7b   : > { %781 = vmatprep.subr.bf16.mxu1 %v1065_v0 }
  0x7c   : > { %759 = vmatpush3.bf16.msra.mxu0 %v758_v21 }
  0x7d   : > { %760 = vmatprep.subr.bf16.mxu0 %v1065_v0 }
  0x7e   : > { %783 = vmatpush3.bf16.msra.mxu1 %v782_v38 }
  0x7f   : > { %784 = vmatprep.subr.bf16.mxu1 %v1065_v0 }
  0x80   : > { %762 = vmatpush3.bf16.msra.mxu0 %v761_v25 }
  0x81   : > { %763 = vmatprep.subr.bf16.mxu0 %v1065_v0 }
  0x82   : > { %786 = vmatpush3.bf16.msra.mxu1 %v785_v41 }
  0x83   : > { %787 = vmatprep.subr.bf16.mxu1 %v1065_v0 }
  0x84   : > { %765 = vmatpush3.bf16.msra.mxu0 %v764_v28 }
  0x85   : > { %766 = vmatprep.subr.bf16.mxu0 %v1065_v0 }
  0x86   : > { %789 = vmatpush3.bf16.msra.mxu1 %v788_v44 }
  0x87   : > { %790 = vmatprep.subr.bf16.mxu1 %v1065_v0 }
  0x88   : > { %768 = vmatpush3.bf16.msra.mxu0 %v767_v31 }
  0x89   : > { %769 = vmatprep.subr.bf16.mxu0 %v1065_v0 }
  0x8a   : > { %792 = vmatpush3.bf16.msra.mxu1 %v791_v47 }
  0x8b   : > { %793 = vmatprep.subr.bf16.mxu1 %v1065_v0 }
  0x8c   : > { %771 = vmatpush3.bf16.msra.mxu0 %v770_v34 }
  0x8e   : > { %795 = vmatpush3.bf16.msra.mxu1 %v794_v50 }
  0x8f   : > { %711 = vmatmul.mubr.f32.vlgmr.msra.gmra.mrb[0].mxu0 %v304_v35 }
 0x162   : > { %v394_v52 = vpop.f32.mrb[0].mxu0 }
 0x163   : > { %v395_v53 = vadd.f32 %v638_v51, %v394_v52  ;;  %v712_v54 = vpop.f32.mrb[1].mxu0 }
 0x165   : > { %v399_v55 = vmul.f32 0.70710677, %v395_v53  ;;  %v398_v57 = vmul.f32 0.5, %v395_v53 }
 0x167   : > { %884 = verf.f32 %v399_v55 }
 0x171   : > { %v885_v56 = vpop.eup %884 }
 0x172   : > { %v401_v58 = vadd.f32 1.0, %v885_v56 }
 0x174   : > { %v402_v59 = vmul.f32 %v401_v58, %v398_v57 }
 0x176   : > { %746 = vmatmul.mubr.f32.vlgmr.msra.gmra.mrb[0].mxu1 %v402_v59 }
 0x249   : > { %v492_v61 = vpop.f32.mrb[0].mxu1 }
 0x24a   : > { %v493_v62 = vadd.f32 %v639_v60, %v492_v61  ;;  %v747_v63 = vpop.f32.mrb[1].mxu1 }
 0x24c   : > { %496 = vst [vmem:[%s300_s9] sm:$0xff] %v493_v62 }
 0x24d   : > { %985 = shalt.err (!%p982_p11)
}
 0x24e   : > { %s986_s13 = scalar_lea.hbm %s1329_s14, 128  ;;  %s990_s30 = scalar_lea.hbm %s1383_s5, 256 }
 0x24f   : > { %p987_p0 = scmp.ne.s32.totalorder %s1329_s14, %s986_s13  ;;  %p991_p6 = scmp.lt.u32.totalorder %s1329_s14, %s1383_s5 }
 0x250   : > { %p992_p7 = scmp.lt.u32.totalorder %s990_s30, %s986_s13  ;;  %p994_p8 = scmp.lt.u32.totalorder %s986_s13, %s1329_s14 }
 0x251   : > { %p988_p4 = pnand %p987_p0, %p1398_p12 }
 0x252   : > { %p993_p2 = por %p992_p7, %p991_p6 }
 0x253   : > { %p989_p13 = pneg %p988_p4 }
 0x254   : > { %p995_p1 = por %p994_p8, %p993_p2 }
 0x256   : > { %p996_p10 = pnand %p995_p1, %p989_p13 }
 0x258   : > { %999 = shalt.err (!%p996_p10)
}
 0x259   : > { %806 = dma.vmem_to_hbm [thread:$0]  (%p1398_p12), %s1331_s11, 128, %s1329_s14, %s498_s10  }
 0x25a PF: > { %s524_s9 = sand.u32 1, %s1038_s18   ;;  %p1399_p3 = scmp.ne.s32.totalorder %s1391_s29, 0 }
 0x25b   : > { %p1400_p5 = scmp.ge.s32.totalorder %s1058_s23, 2  ;;  %s525_s15 = scalar_lea.sflag [#allocation4], %s524_s9 }
 0x25d   : > { %p820_p9 = pnand %p1400_p5, %p1399_p3 }
 0x25f   : > { %1033 = dma.done.wait (!%p820_p9), %s525_s15, 128  }
 0x260   : > { %1035 = vsyncadd (!%p820_p9), %s525_s15, 4294967168  ;;  %s22_s23 = sadd.s32 1, %s1058_s23   ;;  %s1401_s18 = smov %s1042_s19 }
 0x261   : > { %p19_p11 = scmp.ge.s32.totalorder %s22_s23, 4   ;;  %s1402_s19 = smov %s1046_s20 }
 0x262   : > { %s1403_s20 = smov %s1241_s6  ;;  %s1404_s21 = smov %s1054_s22 }
 0x263   : > { %s1405_s22 = smov %s1407_s12  ;;  %21 = sbr.rel (!%p19_p11) target bundleno = 7 (0x7), region = 97 }
 0x26a   :  { %530 = vsyncpa [#allocation3], 1 }
 0x26b   :  { %532 = vsyncpa [#allocation3 + $0x1], 1 }
 0x26c   :  { %533 = vsyncpa [#allocation6], 1 }
 0x26d   :  { %534 = vsyncpa [#allocation4], 1 }
 0x26e   :  { %536 = vsyncpa [#allocation4 + $0x1], 1 }

// kernel: tpu_custom_call.1
= control target key start
LH: loop header
LB: loop body
LE: loop exit
PB: predicated region body
PF: predicated region fallthrough
CT: control target
= control target key end

     0   :  { %10 = vsyncpa [#allocation3], 0  ;;  %s1378_s0 = inlined_call_operand.hbm [shape: f32[16,128], index: 0, kind: input, shape index: {}]   ;;  %s1379_s1 = inlined_call_operand.hbm [shape: f32[128,128], index: 1, kind: input, shape index: {}]   ;;  %s1380_s2 = inlined_call_operand.vmem [shape: f32[1,128], index: 2, kind: input, shape index: {}]   ;;  %s1381_s3 = inlined_call_operand.hbm [shape: f32[128,128], index: 3, kind: input, shape index: {}]   ;;  %s1382_s4 = inlined_call_operand.vmem [shape: f32[1,128], index: 4, kind: input, shape index: {}]   ;;  %s1383_s5 = inlined_call_operand.hbm [shape: f32[16,128], index: 5, kind: output, shape index: {}]  }
   0x1   :  { %12 = vsyncpa [#allocation3 + $0x1], 0 }
   0x2   :  { %13 = vsyncpa [#allocation6], 0 }
   0x3   :  { %14 = vsyncpa [#allocation4], 0 }
   0x4   :  { %16 = vsyncpa [#allocation4 + $0x1], 0  ;;  %s1099_s18 = smov 0   ;;  %s1101_s19 = smov 0  }
   0x5   :  { %s1103_s20 = smov 0   ;;  %s1105_s21 = smov 0  }
   0x6   :  { %s1107_s22 = smov 0   ;;  %s1109_s23 = smov 0  }
   0x7 LB: > { %s624_s24 = sadd.s32 4294967295, %s1058_s23   ;;  %s625_s25 = sadd.s32 4294967294, %s1058_s23   ;;  %s1058_s23 = sphi %s1109_s23, %s22_s23   ;;  %s1054_s22 = sphi %s1107_s22, %s1405_s22   ;;  %s1050_s21 = sphi %s1105_s21, %s1404_s21   ;;  %s1046_s20 = sphi %s1103_s20, %s1403_s20   ;;  %s1042_s19 = sphi %s1101_s19, %s1402_s19   ;;  %s1038_s18 = sphi %s1099_s18, %s1401_s18  }
   0x8   : > { %p54_p0 = scmp.ne.s32.totalorder %s1042_s19, %s1038_s18  ;;  %p1133_p1 = scmp.eq.s32.totalorder %s624_s24, 0 }
   0x9   : > { %p1137_p2 = scmp.eq.s32.totalorder %s624_s24, 1  ;;  %p180_p3 = scmp.eq.s32.totalorder %s625_s25, 1 }
   0xa   : > { %s1388_s26 = scalar_select %p1133_p1, 1, 0 }
   0xb   : > { %p1143_p4 = por %p1133_p1, %p54_p0  ;;  %p626_p5 = scmp.ge.s32.totalorder %s1058_s23, 1 }
   0xc   : > { %p1148_p6 = por %p180_p3, %p54_p0  ;;  %p187_p7 = scmp.lt.s32.totalorder %s1058_s23, 3 }
   0xd   : > { %s1390_s28 = scalar_select %p1143_p4, 1, 0 }
   0xe   : > { %s1391_s29 = scalar_select %p1148_p6, 1, 0 }
   0xf   : > { %p1153_p8 = pnand %p626_p5, %p187_p7  ;;  %s1060_s6 = smov [#allocation5]  }
  0x10   : > { %s199_s7 = sshll.u32 %s1060_s6, 4  ;;  %s1061_s9 = smov [#allocation7]   ;;  %s1157_s7 = int_to_ptr.vmem [resolvable:$true] %s199_s7 }
  0x11   : > { %p808_p9 = pneg %p1153_p8  ;;  %s217_s10 = sshll.u32 %s1061_s9, 4  ;;  %s1168_s10 = int_to_ptr.vmem [resolvable:$true] %s217_s10 }
  0x12   : > { %s886_s13 = scalar_lea.hbm %s1379_s1, 2048 }
  0x13   : > { %p1164_p11 = pnand %p808_p9, %p1133_p1  ;;  %p887_p12 = scmp.ne.s32.totalorder %s1379_s1, %s886_s13 }
  0x14   : > { %p893_p5 = scmp.lt.u32.totalorder %s886_s13, %s1379_s1 }
  0x15   : > { %p888_p13 = pneg %p1164_p11 }
  0x17   : > { %p889_p0 = pnand %p888_p13, %p887_p12 }
  0x19   : > { %p890_p3 = pneg %p889_p0 }
  0x1b   : > { %p895_p7 = pnand %p893_p5, %p890_p3 }
  0x1d   : > { %898 = shalt.err (!%p895_p7)
}
  0x1e   : > { %s899_s24 = scalar_lea.vmem %s1157_s7, 2048  ;;  %p907_p1 = scmp.lt.s32.totalorder %s1157_s7, %s1157_s7 }
  0x1f   : > { %p900_p9 = scmp.ne.s32.totalorder %s1157_s7, %s899_s24  ;;  %p908_p12 = scmp.lt.s32.totalorder %s899_s24, %s899_s24 }
  0x21   : > { %p902_p10 = pnand %p900_p9, %p888_p13  ;;  %p909_p0 = por %p908_p12, %p907_p1 }
  0x23   : > { %p903_p6 = pneg %p902_p10 }
  0x25   : > { %p910_p4 = pnand %p909_p0, %p903_p6 }
  0x27   : > { %913 = shalt.err (!%p910_p4)
}
  0x28   : > { %s1062_s25 = smov 128   ;;  %s1063_s6 = smov 8  }
  0x29   : > { %811 = dma.hbm_to_vmem [thread:$0]  (!%p1164_p11), %s1379_s1, 2048, %s1157_s7, [#allocation6], %s1062_s25, %s1062_s25, %s1063_s6  }
  0x2a   : > { %s914_s14 = scalar_lea.hbm %s1381_s3, 2048 }
  0x2b   : > { %p915_p1 = scmp.ne.s32.totalorder %s1381_s3, %s914_s14  ;;  %p921_p10 = scmp.lt.u32.totalorder %s914_s14, %s1381_s3 }
  0x2d   : > { %p917_p4 = pnand %p915_p1, %p888_p13 }
  0x2f   : > { %p918_p6 = pneg %p917_p4 }
  0x31   : > { %p923_p3 = pnand %p921_p10, %p918_p6 }
  0x33   : > { %926 = shalt.err (!%p923_p3)
}
  0x34   : > { %s927_s7 = scalar_lea.vmem %s1168_s10, 2048  ;;  %p935_p12 = scmp.lt.s32.totalorder %s1168_s10, %s1168_s10 }
  0x35   : > { %p928_p5 = scmp.ne.s32.totalorder %s1168_s10, %s927_s7  ;;  %p936_p0 = scmp.lt.s32.totalorder %s927_s7, %s927_s7 }
  0x37   : > { %p930_p7 = pnand %p928_p5, %p888_p13  ;;  %p937_p1 = por %p936_p0, %p935_p12 }
  0x39   : > { %p931_p9 = pneg %p930_p7 }
  0x3b   : > { %p938_p4 = pnand %p937_p1, %p931_p9 }
  0x3d   : > { %941 = shalt.err (!%p938_p4)
}
  0x3e   : > { %814 = dma.hbm_to_vmem [thread:$0]  (!%p1164_p11), %s1381_s3, 2048, %s1168_s10, [#allocation6], %s1062_s25, %s1062_s25, %s1063_s6  }
  0x3f   : > { %s34_s12 = sadd.s32 1, %s1054_s22  ;;  %s41_s13 = sadd.s32 1, %s1046_s20 }
  0x40   : > { %p36_p13 = scmp.ge.s32.totalorder %s34_s12, 2  ;;  %p48_p6 = scmp.ne.s32.totalorder %s1046_s20, %s1042_s19 }
  0x41   : > { %p49_p10 = scmp.eq.s32.totalorder %s1058_s23, 0  ;;  %p825_p3 = scmp.lt.s32.totalorder %s1058_s23, 2 }
  0x42   : > { %s1407_s12 = smov (%p36_p13, %s34_s12), 0  ;;  %p1232_p7 = por %p1137_p2, %p48_p6 }
  0x43   : > { %p50_p5 = por %p49_p10, %p48_p6  ;;  %s38_s14 = ssub.s32 %s1054_s22, %s1407_s12 }
  0x44   : > { %s1394_s8 = scalar_select %p1232_p7, 1, 0 }
  0x45   : > { %s237_s15 = sand.u32 1, %s1046_s20   ;;  %p39_p9 = scmp.eq.s32.totalorder %s38_s14, 0 }
  0x46   : > { %s631_s10 = sshll.u32 %s237_s15, 3  ;;  %s632_s25 = sshll.u32 %s1054_s22, 7 }
  0x47   : > { %s1241_s6 = scalar_select %p39_p9, %s1046_s20, %s41_s13  }
  0x48   : > { %s1246_s24 = scalar_lea.hbm %s1378_s0, %s632_s25  ;;  %s241_s27 = scalar_lea.vmem [#allocation2], %s631_s10 }
  0x49   : > { %s248_s7 = sshll.u32 %s241_s27, 4  ;;  %p1250_p2 = pnand %p825_p3, %p50_p5  ;;  %s1254_s7 = int_to_ptr.vmem [resolvable:$true] %s248_s7 }
  0x4a   : > { %s238_s11 = scalar_lea.sflag [#allocation3], %s237_s15  ;;  %s942_s13 = scalar_lea.hbm %s1246_s24, 128 }
  0x4b   : > { %p943_p11 = scmp.ne.s32.totalorder %s1246_s24, %s942_s13  ;;  %p944_p12 = pneg %p1250_p2 }
  0x4c   : > { %s947_s25 = scalar_lea.hbm %s1378_s0, 256  ;;  %p948_p4 = scmp.lt.u32.totalorder %s1246_s24, %s1378_s0 }
  0x4d   : > { %p945_p0 = pnand %p944_p12, %p943_p11  ;;  %p949_p13 = scmp.lt.u32.totalorder %s947_s25, %s942_s13 }
  0x4e   : > { %p951_p10 = scmp.lt.u32.totalorder %s942_s13, %s1246_s24 }
  0x4f   : > { %p946_p1 = pneg %p945_p0  ;;  %p950_p6 = por %p949_p13, %p948_p4 }
  0x51   : > { %p952_p3 = por %p951_p10, %p950_p6 }
  0x53   : > { %p953_p5 = pnand %p952_p3, %p946_p1 }
  0x55   : > { %956 = shalt.err (!%p953_p5)
}
  0x56   : > { %s957_s15 = scalar_lea.vmem %s1254_s7, 128  ;;  %s1064_s27 = smov [#allocation2]  }
  0x57   : > { %p958_p9 = scmp.ne.s32.totalorder %s1254_s7, %s957_s15  ;;  %s962_s14 = sshll.u32 %s1064_s27, 4  ;;  %s963_s14 = int_to_ptr.vmem [resolvable:$false] %s962_s14 }
  0x58   : > { %s964_s10 = scalar_lea.vmem %s963_s14, 256  ;;  %p965_p7 = scmp.lt.s32.totalorder %s1254_s7, %s963_s14 }
  0x59   : > { %p960_p11 = pnand %p958_p9, %p944_p12  ;;  %p966_p4 = scmp.lt.s32.totalorder %s964_s10, %s957_s15 }
  0x5b   : > { %p961_p0 = pneg %p960_p11  ;;  %p967_p13 = por %p966_p4, %p965_p7 }
  0x5d   : > { %p968_p6 = pnand %p967_p13, %p961_p0 }
  0x5f   : > { %971 = shalt.err (!%p968_p6)
}
  0x60   : > { %818 = dma.hbm_to_vmem [thread:$0]  (!%p1250_p2), %s1246_s24, 128, %s1254_s7, %s238_s11  }
  0x61   : > { %257 = sbr.rel (%p1153_p8) target bundleno = 602 (0x25a), region = 40  ;;  %s1284_s13 = sand.u32 (!%p1153_p8), 1, %s1042_s19  }
  0x62   : > { %s634_s25 = sshll.u32 (!%p1153_p8), %s1284_s13, 3  ;;  %s260_s16 = scalar_lea.sflag (!%p1153_p8), [#allocation3], %s1284_s13 }
  0x63   : > { %s1290_s17 = scalar_lea.vmem (!%p1153_p8), [#allocation2], %s634_s25  ;;  %p1396_p7 = scmp.ne.s32.totalorder (!%p1153_p8), %s1390_s28, 0 }
  0x68   : > { %1025 = dma.done.wait (%p1396_p7), %s260_s16, 128  }
  0x69   : > { %1027 = vsyncadd (%p1396_p7), %s260_s16, 4294967168  ;;  %p1397_p2 = scmp.ne.s32.totalorder %s1388_s26, 0 }
  0x6b   : > { %1029 = dma.done.wait (%p1397_p2), [#allocation6], 4096  }
  0x6c   : > { %1031 = vsyncadd (%p1397_p2), [#allocation6], 4294963200  ;;  %v1065_v0 = vmov 0.0|0.0   ;;  %vm1066_vm0 = vmmov 0   ;;  %v1067_v1 = vmov 0.0   ;;  %v305_v2 = vld [vmem:[#allocation5] sm:$0xff] }
  0x6d   : > { %748 = vmatprep.subr.bf16.mxu0 %v1065_v0  ;;  %710 = vmatprep.mubr.msk.f32.mxu0 %vm1066_vm0, %v1067_v1  ;;  %v306_v3 = vld [vmem:[#allocation5 + $0x8] sm:$0xff]  ;;  %v307_v4 = vld [vmem:[#allocation5 + $0x10] sm:$0xff]  ;;  %v308_v6 = vld [vmem:[#allocation5 + $0x18] sm:$0xff]  ;;  %s641_s7 = sshll.u32 %s1050_s21, 7  ;;  %s300_s9 = scalar_lea.vmem [#allocation8], %s634_s25 }
  0x6e   : > { %772 = vmatprep.subr.bf16.mxu1 %v1065_v0  ;;  %745 = vmatprep.mubr.msk.f32.mxu1 %vm1066_vm0, %v1067_v1  ;;  %v749_v5 = vpack.c.bf16 %v306_v3, %v305_v2  ;;  %v752_v7 = vpack.c.bf16 %v308_v6, %v307_v4  ;;  %v309_v8 = vld [vmem:[#allocation5 + $0x20] sm:$0xff]  ;;  %v310_v9 = vld [vmem:[#allocation5 + $0x28] sm:$0xff]  ;;  %v405_v12 = vld [vmem:[#allocation7 + $0x10] sm:$0xff]  ;;  %s512_s11 = sshll.u32 %s300_s9, 4  ;;  %s1329_s14 = scalar_lea.hbm %s1383_s5, %s641_s7  ;;  %s1331_s11 = int_to_ptr.vmem [resolvable:$true] %s512_s11 }
  0x6f   : > { %v403_v10 = vld [vmem:[#allocation7] sm:$0xff]  ;;  %v404_v11 = vld [vmem:[#allocation7 + $0x8] sm:$0xff]  ;;  %v406_v13 = vld [vmem:[#allocation7 + $0x18] sm:$0xff]  ;;  %v755_v14 = vpack.c.bf16 %v310_v9, %v309_v8  ;;  %s498_s10 = scalar_lea.sflag [#allocation4], %s1284_s13  ;;  %s972_s16 = scalar_lea.vmem %s1331_s11, 128 }
  0x70   : > { %750 = vmatpush3.bf16.msra.mxu0 %v749_v5  ;;  %v773_v15 = vpack.c.bf16 %v404_v11, %v403_v10  ;;  %v311_v16 = vld [vmem:[#allocation5 + $0x30] sm:$0xff]  ;;  %v312_v17 = vld [vmem:[#allocation5 + $0x38] sm:$0xff]  ;;  %v776_v18 = vpack.c.bf16 %v406_v13, %v405_v12  ;;  %v407_v19 = vld [vmem:[#allocation7 + $0x20] sm:$0xff]  ;;  %p973_p8 = scmp.ne.s32.totalorder %s1331_s11, %s972_s16  ;;  %p1398_p12 = scmp.ne.s32.totalorder %s1394_s8, 0 }
  0x71   : > { %751 = vmatprep.subr.bf16.mxu0 %v1065_v0  ;;  %v408_v20 = vld [vmem:[#allocation7 + $0x28] sm:$0xff]  ;;  %v758_v21 = vpack.c.bf16 %v312_v17, %v311_v16  ;;  %v313_v22 = vld [vmem:[#allocation5 + $0x40] sm:$0xff]  ;;  %v315_v26 = vld [vmem:[#allocation5 + $0x50] sm:$0xff]  ;;  %s1068_s21 = smov [#allocation8]  }
  0x72   : > { %774 = vmatpush3.bf16.msra.mxu1 %v773_v15  ;;  %v314_v23 = vld [vmem:[#allocation5 + $0x48] sm:$0xff]  ;;  %v779_v24 = vpack.c.bf16 %v408_v20, %v407_v19  ;;  %v316_v27 = vld [vmem:[#allocation5 + $0x58] sm:$0xff]  ;;  %v317_v29 = vld [vmem:[#allocation5 + $0x60] sm:$0xff]  ;;  %p974_p1 = pnand %p973_p8, %p1398_p12  ;;  %s976_s25 = sshll.u32 %s1068_s21, 4  ;;  %s977_s25 = int_to_ptr.vmem [resolvable:$false] %s976_s25 }
  0x73   : > { %775 = vmatprep.subr.bf16.mxu1 %v1065_v0  ;;  %v761_v25 = vpack.c.bf16 %v314_v23, %v313_v22  ;;  %v764_v28 = vpack.c.bf16 %v316_v27, %v315_v26  ;;  %v318_v30 = vld [vmem:[#allocation5 + $0x68] sm:$0xff]  ;;  %v319_v32 = vld [vmem:[#allocation5 + $0x70] sm:$0xff]  ;;  %v320_v33 = vld [vmem:[#allocation5 + $0x78] sm:$0xff]  ;;  %p979_p3 = scmp.lt.s32.totalorder %s1331_s11, %s977_s25 }
  0x74   : > { %753 = vmatpush3.bf16.msra.mxu0 %v752_v7  ;;  %v767_v31 = vpack.c.bf16 %v318_v30, %v317_v29  ;;  %v770_v34 = vpack.c.bf16 %v320_v33, %v319_v32  ;;  %v304_v35 = vld [vmem:[%s1290_s17] sm:$0xff]  ;;  %v411_v39 = vld [vmem:[#allocation7 + $0x40] sm:$0xff]  ;;  %v412_v40 = vld [vmem:[#allocation7 + $0x48] sm:$0xff]  ;;  %p975_p10 = pneg %p974_p1  ;;  %s978_s17 = scalar_lea.vmem %s977_s25, 256 }
  0x75   : > { %754 = vmatprep.subr.bf16.mxu0 %v1065_v0  ;;  %v409_v36 = vld [vmem:[#allocation7 + $0x30] sm:$0xff]  ;;  %v410_v37 = vld [vmem:[#allocation7 + $0x38] sm:$0xff]  ;;  %v785_v41 = vpack.c.bf16 %v412_v40, %v411_v39  ;;  %v415_v45 = vld [vmem:[#allocation7 + $0x60] sm:$0xff]  ;;  %p980_p5 = scmp.lt.s32.totalorder %s978_s17, %s972_s16 }
  0x76   : > { %777 = vmatpush3.bf16.msra.mxu1 %v776_v18  ;;  %v782_v38 = vpack.c.bf16 %v410_v37, %v409_v36  ;;  %v413_v42 = vld [vmem:[#allocation7 + $0x50] sm:$0xff]  ;;  %v414_v43 = vld [vmem:[#allocation7 + $0x58] sm:$0xff]  ;;  %v416_v46 = vld [vmem:[#allocation7 + $0x68] sm:$0xff] }
  0x77   : > { %778 = vmatprep.subr.bf16.mxu1 %v1065_v0  ;;  %v788_v44 = vpack.c.bf16 %v414_v43, %v413_v42  ;;  %v791_v47 = vpack.c.bf16 %v416_v46, %v415_v45  ;;  %v417_v48 = vld [vmem:[#allocation7 + $0x70] sm:$0xff]  ;;  %v418_v49 = vld [vmem:[#allocation7 + $0x78] sm:$0xff]  ;;  %p981_p9 = por %p980_p5, %p979_p3 }
  0x78   : > { %756 = vmatpush3.bf16.msra.mxu0 %v755_v14  ;;  %v794_v50 = vpack.c.bf16 %v418_v49, %v417_v48  ;;  %v638_v51 = vld [vmem:[%s1380_s2] ss:$0 sm:$0xff] }
  0x79   : > { %757 = vmatprep.subr.bf16.mxu0 %v1065_v0  ;;  %v639_v60 = vld [vmem:[%s1382_s4] ss:$0 sm:$0xff]  ;;  %p982_p11 = pnand %p981_p9, %p975_p10 }
  0x7a   : > { %780 = vmatpush3.bf16.msra.mxu1 %v779_v24 }
  0x7b   : > { %781 = vmatprep.subr.bf16.mxu1 %v1065_v0 }
  0x7c   : > { %759 = vmatpush3.bf16.msra.mxu0 %v758_v21 }
  0x7d   : > { %760 = vmatprep.subr.bf16.mxu0 %v1065_v0 }
  0x7e   : > { %783 = vmatpush3.bf16.msra.mxu1 %v782_v38 }
  0x7f   : > { %784 = vmatprep.subr.bf16.mxu1 %v1065_v0 }
  0x80   : > { %762 = vmatpush3.bf16.msra.mxu0 %v761_v25 }
  0x81   : > { %763 = vmatprep.subr.bf16.mxu0 %v1065_v0 }
  0x82   : > { %786 = vmatpush3.bf16.msra.mxu1 %v785_v41 }
  0x83   : > { %787 = vmatprep.subr.bf16.mxu1 %v1065_v0 }
  0x84   : > { %765 = vmatpush3.bf16.msra.mxu0 %v764_v28 }
  0x85   : > { %766 = vmatprep.subr.bf16.mxu0 %v1065_v0 }
  0x86   : > { %789 = vmatpush3.bf16.msra.mxu1 %v788_v44 }
  0x87   : > { %790 = vmatprep.subr.bf16.mxu1 %v1065_v0 }
  0x88   : > { %768 = vmatpush3.bf16.msra.mxu0 %v767_v31 }
  0x89   : > { %769 = vmatprep.subr.bf16.mxu0 %v1065_v0 }
  0x8a   : > { %792 = vmatpush3.bf16.msra.mxu1 %v791_v47 }
  0x8b   : > { %793 = vmatprep.subr.bf16.mxu1 %v1065_v0 }
  0x8c   : > { %771 = vmatpush3.bf16.msra.mxu0 %v770_v34 }
  0x8e   : > { %795 = vmatpush3.bf16.msra.mxu1 %v794_v50 }
  0x8f   : > { %711 = vmatmul.mubr.f32.vlgmr.msra.gmra.mrb[0].mxu0 %v304_v35 }
 0x162   : > { %v394_v52 = vpop.f32.mrb[0].mxu0 }
 0x163   : > { %v395_v53 = vadd.f32 %v638_v51, %v394_v52  ;;  %v712_v54 = vpop.f32.mrb[1].mxu0 }
 0x165   : > { %v399_v55 = vmul.f32 0.70710677, %v395_v53  ;;  %v398_v57 = vmul.f32 0.5, %v395_v53 }
 0x167   : > { %884 = verf.f32 %v399_v55 }
 0x171   : > { %v885_v56 = vpop.eup %884 }
 0x172   : > { %v401_v58 = vadd.f32 1.0, %v885_v56 }
 0x174   : > { %v402_v59 = vmul.f32 %v401_v58, %v398_v57 }
 0x176   : > { %746 = vmatmul.mubr.f32.vlgmr.msra.gmra.mrb[0].mxu1 %v402_v59 }
 0x249   : > { %v492_v61 = vpop.f32.mrb[0].mxu1 }
 0x24a   : > { %v493_v62 = vadd.f32 %v639_v60, %v492_v61  ;;  %v747_v63 = vpop.f32.mrb[1].mxu1 }
 0x24c   : > { %496 = vst [vmem:[%s300_s9] sm:$0xff] %v493_v62 }
 0x24d   : > { %985 = shalt.err (!%p982_p11)
}
 0x24e   : > { %s986_s13 = scalar_lea.hbm %s1329_s14, 128  ;;  %s990_s30 = scalar_lea.hbm %s1383_s5, 256 }
 0x24f   : > { %p987_p0 = scmp.ne.s32.totalorder %s1329_s14, %s986_s13  ;;  %p991_p6 = scmp.lt.u32.totalorder %s1329_s14, %s1383_s5 }
 0x250   : > { %p992_p7 = scmp.lt.u32.totalorder %s990_s30, %s986_s13  ;;  %p994_p8 = scmp.lt.u32.totalorder %s986_s13, %s1329_s14 }
 0x251   : > { %p988_p4 = pnand %p987_p0, %p1398_p12 }
 0x252   : > { %p993_p2 = por %p992_p7, %p991_p6 }
 0x253   : > { %p989_p13 = pneg %p988_p4 }
 0x254   : > { %p995_p1 = por %p994_p8, %p993_p2 }
 0x256   : > { %p996_p10 = pnand %p995_p1, %p989_p13 }
 0x258   : > { %999 = shalt.err (!%p996_p10)
}
 0x259   : > { %806 = dma.vmem_to_hbm [thread:$0]  (%p1398_p12), %s1331_s11, 128, %s1329_s14, %s498_s10  }
 0x25a PF: > { %s524_s9 = sand.u32 1, %s1038_s18   ;;  %p1399_p3 = scmp.ne.s32.totalorder %s1391_s29, 0 }
 0x25b   : > { %p1400_p5 = scmp.ge.s32.totalorder %s1058_s23, 2  ;;  %s525_s15 = scalar_lea.sflag [#allocation4], %s524_s9 }
 0x25d   : > { %p820_p9 = pnand %p1400_p5, %p1399_p3 }
 0x25f   : > { %1033 = dma.done.wait (!%p820_p9), %s525_s15, 128  }
 0x260   : > { %1035 = vsyncadd (!%p820_p9), %s525_s15, 4294967168  ;;  %s22_s23 = sadd.s32 1, %s1058_s23   ;;  %s1401_s18 = smov %s1042_s19 }
 0x261   : > { %p19_p11 = scmp.ge.s32.totalorder %s22_s23, 4   ;;  %s1402_s19 = smov %s1046_s20 }
 0x262   : > { %s1403_s20 = smov %s1241_s6  ;;  %s1404_s21 = smov %s1054_s22 }
 0x263   : > { %s1405_s22 = smov %s1407_s12  ;;  %21 = sbr.rel (!%p19_p11) target bundleno = 7 (0x7), region = 97 }
 0x26a   :  { %530 = vsyncpa [#allocation3], 1 }
 0x26b   :  { %532 = vsyncpa [#allocation3 + $0x1], 1 }
 0x26c   :  { %533 = vsyncpa [#allocation6], 1 }
 0x26d   :  { %534 = vsyncpa [#allocation4], 1 }
 0x26e   :  { %536 = vsyncpa [#allocation4 + $0x1], 1 }

</bundles_post_ra>
